<compile_context>
chip_gen: v6e
topology: v6e:2x2x1
jax: 0.10.0
libtpu: 0.0.40
codegen_flags: <defaults>
</compile_context>

<pallas_src>
import functools

import jax
import jax.numpy as jnp
from jax import lax
from jax.experimental import pallas as pl
from jax.experimental.pallas import tpu as pltpu


# --------------------------------------------------------------------------
# Kernel 1: fused QKV projection  (qkv = x @ [Wq*s | Wk | Wv] + [bq*s | bk | bv])
# --------------------------------------------------------------------------
def _qkv_proj_kernel(x_ref, w_ref, b_ref, q_out_ref, kv_out_ref):
    # x_ref: (1, tq, C) bf16; w_ref: (C, 3C) bf16; b_ref: (1, 3C) f32
    C = x_ref.shape[2]
    x = x_ref[0]                                              # (tq, C) bf16
    qkv = jnp.dot(x, w_ref[...], preferred_element_type=jnp.float32) + b_ref[...]
    q_out_ref[0] = qkv[:, :C].astype(q_out_ref.dtype)          # (tq, C)  pre-scaled Q
    kv_out_ref[0] = qkv[:, C:].astype(kv_out_ref.dtype)        # (tq, 2C) [K | V]


# --------------------------------------------------------------------------
# Kernel 2: flash-style causal attention + output projection
#           (triangular KV schedule via scalar prefetch)
# --------------------------------------------------------------------------
def _flash_attn_kernel(q_sched_ref, kv_sched_ref,            # SMEM scalar prefetch
                       q_ref, kv_ref, wo_ref, bo_ref,         # VMEM inputs
                       out_ref,                               # VMEM output
                       m_ref, l_ref, acc_ref,                 # VMEM scratch
                       *, h, bf16_exp):
    # q_ref:  (1, tq, C)  bf16 (already scaled by d_k**-0.5)
    # kv_ref: (1, tk, 2C) bf16  ([K | V] for one KV tile)
    # wo_ref: (C, C) bf16; bo_ref: (1, C) f32; out_ref: (1, tq, C)
    # scratch: m_ref/l_ref (h, tq, 1) f32, acc_ref (tq, C) f32
    _, tq, C = q_ref.shape
    tk = kv_ref.shape[1]
    dk = C // h
    exp_dtype = jnp.bfloat16 if bf16_exp else jnp.float32

    step = pl.program_id(1)
    qi = q_sched_ref[step]
    kvi = kv_sched_ref[step]
    q_start = qi * tq
    k_start = kvi * tk
    last_kv = (q_start + tq - 1) // tk          # last KV block for this q tile

    @pl.when(kvi == 0)
    def _init():
        m_ref[...] = jnp.full_like(m_ref, -1e30)
        l_ref[...] = jnp.zeros_like(l_ref)
        acc_ref[...] = jnp.zeros_like(acc_ref)

    def _attn_update(masked):
        q = q_ref[0]                                          # (tq, C)  bf16
        kvt = kv_ref[0]                                       # (tk, 2C) bf16
        if masked:
            row = q_start + lax.broadcasted_iota(jnp.int32, (tq, tk), 0)
            col = k_start + lax.broadcasted_iota(jnp.int32, (tq, tk), 1)
            causal = row >= col

        pv_parts = []
        alpha_parts = []
        for i in range(h):                                    # static head loop
            lo, hi = i * dk, (i + 1) * dk
            qh = q[:, lo:hi]                                  # (tq, dk) bf16
            kh = kvt[:, lo:hi]                                # (tk, dk) bf16
            vh = kvt[:, C + lo:C + hi]                        # (tk, dk) bf16

            # Contract on dk of both operands: no XLU transpose of K.
            s = lax.dot_general(qh, kh, (((1,), (1,)), ((), ())),
                                preferred_element_type=jnp.float32)  # (tq, tk)
            if masked:
                s = jnp.where(causal, s, jnp.float32(-1e30))  # finite mask (no NaN)

            m_prev = m_ref[i]                                 # (tq, 1)
            m_new = jnp.maximum(m_prev, jnp.max(s, axis=-1, keepdims=True))
            alpha = jnp.exp((m_prev - m_new).astype(exp_dtype)).astype(jnp.float32)
            p = jnp.exp((s - m_new).astype(exp_dtype))        # bf16 on v6e/v7x EUP

            l_ref[i] = alpha * l_ref[i] + jnp.sum(
                p, axis=-1, keepdims=True, dtype=jnp.float32)
            m_ref[i] = m_new

            pv = jnp.dot(p.astype(jnp.bfloat16), vh,
                         preferred_element_type=jnp.float32)  # (tq, dk) f32
            pv_parts.append(pv)
            alpha_parts.append(jnp.broadcast_to(alpha, (tq, dk)))

        # One lane-dense (tq, C) accumulator update per KV step.
        pv_full = pv_parts[0] if h == 1 else jnp.concatenate(pv_parts, axis=1)
        alpha_full = (alpha_parts[0] if h == 1
                      else jnp.concatenate(alpha_parts, axis=1))
        acc_ref[...] = alpha_full * acc_ref[...] + pv_full

    # Only the block(s) straddling the diagonal pay for mask construction.
    needs_mask = (k_start + tk - 1) > q_start

    @pl.when(needs_mask)
    def _masked():
        _attn_update(True)

    @pl.when(jnp.logical_not(needs_mask))
    def _unmasked():
        _attn_update(False)

    @pl.when(kvi == last_kv)
    def _finalize():
        # Full-width 1/l normalization (reciprocal on the EUP), then fused W_o.
        inv_parts = []
        for i in range(h):
            inv = pl.reciprocal(l_ref[i], approx=True)        # (tq, 1)
            inv_parts.append(jnp.broadcast_to(inv, (tq, dk)))
        inv_full = inv_parts[0] if h == 1 else jnp.concatenate(inv_parts, axis=1)
        ctx = (acc_ref[...] * inv_full).astype(jnp.bfloat16)  # (tq, C)
        out = jnp.dot(ctx, wo_ref[...],
                      preferred_element_type=jnp.float32) + bo_ref[...]
        out_ref[0] = out.astype(out_ref.dtype)


# --------------------------------------------------------------------------
# Wrapper
# --------------------------------------------------------------------------
def _eup_supports_bf16():
    """True on TPU generations whose EUP has a bf16 transcendental path (v6e/v7x)."""
    try:
        kind = jax.devices()[0].device_kind.lower()
    except Exception:
        return False
    if "tpu" not in kind:
        return False
    return not any(v in kind for v in ("v2", "v3", "v4", "v5"))


def multi_head_attention(x, params, h, *, q_tile=256, kv_tile=256, bf16_exp=None):
    """x: (B, T, C) float32; params: dict of weights/biases; returns (B, T, C)."""
    B, T, C = x.shape
    assert C % h == 0
    dk = C // h
    tq = min(q_tile, T)
    tk = min(kv_tile, T)
    assert T % tq == 0 and T % tk == 0, "T must be divisible by the tile sizes"
    nq, nk = T // tq, T // tk
    if bf16_exp is None:
        bf16_exp = _eup_supports_bf16()

    scale = jnp.float32(dk) ** -0.5  # PyTorch uses d_k**-0.5

    # Pack fused QKV weights; fold the score scale into the Q projection.
    w_qkv = jnp.concatenate(
        [params["wq"] * scale, params["wk"], params["wv"]], axis=1
    ).astype(jnp.bfloat16)                                    # (C, 3C)
    b_qkv = jnp.concatenate(
        [params["bq"] * scale, params["bk"], params["bv"]], axis=1
    ).astype(jnp.float32)                                     # (1, 3C)
    wo = params["wo"].astype(jnp.bfloat16)                    # (C, C)
    bo = params["bo"].astype(jnp.float32)                     # (1, C)

    # Stream activations at 2 B/elem.
    x_bf16 = x.astype(jnp.bfloat16)

    # --- Kernel 1: fused QKV projection ---
    # TODO(synk): for d_model >~ 2k, add an output-feature grid axis over the 3C
    # dim of W_qkv and set vmem_limit_bytes (v7x has 64 MiB VMEM per TC).
    q, kv = pl.pallas_call(
        _qkv_proj_kernel,
        out_shape=(
            jax.ShapeDtypeStruct((B, T, C), jnp.bfloat16),      # scaled Q
            jax.ShapeDtypeStruct((B, T, 2 * C), jnp.bfloat16),  # [K | V]
        ),
        grid_spec=pltpu.PrefetchScalarGridSpec(
            num_scalar_prefetch=0,
            grid=(B, nq),
            in_specs=[
                pl.BlockSpec((1, tq, C), lambda b, i: (b, i, 0)),      # x (bf16)
                pl.BlockSpec((C, 3 * C), lambda b, i: (0, 0)),         # W_qkv (resident)
                pl.BlockSpec((1, 3 * C), lambda b, i: (0, 0)),         # b_qkv
            ],
            out_specs=[
                pl.BlockSpec((1, tq, C), lambda b, i: (b, i, 0)),
                pl.BlockSpec((1, tq, 2 * C), lambda b, i: (b, i, 0)),
            ],
        ),
        compiler_params=pltpu.CompilerParams(
            dimension_semantics=("parallel", "parallel")),
    )(x_bf16, w_qkv, b_qkv)

    # --- Triangular (q tile, kv tile) schedule: only causally-live blocks ---
    # For each q tile, KV blocks are visited 0..last in order so (a) init fires
    # on kvi==0, (b) every row sees an unmasked column before any masked one.
    sched = []
    for qi_ in range(nq):
        last = (qi_ * tq + tq - 1) // tk
        for kvi_ in range(last + 1):
            sched.append((qi_, kvi_))
    n_steps = len(sched)
    q_sched = jnp.asarray([s[0] for s in sched], dtype=jnp.int32)
    kv_sched = jnp.asarray([s[1] for s in sched], dtype=jnp.int32)

    # --- Kernel 2: flash attention + output projection ---
    out = pl.pallas_call(
        functools.partial(_flash_attn_kernel, h=h, bf16_exp=bf16_exp),
        out_shape=jax.ShapeDtypeStruct((B, T, C), x.dtype),
        grid_spec=pltpu.PrefetchScalarGridSpec(
            num_scalar_prefetch=2,                            # q_sched, kv_sched
            grid=(B, n_steps),                                # flattened triangular schedule
            in_specs=[
                pl.BlockSpec((1, tq, C), lambda b, s, qs, ks: (b, qs[s], 0)),      # Q tile
                pl.BlockSpec((1, tk, 2 * C), lambda b, s, qs, ks: (b, ks[s], 0)),  # [K|V] tile
                pl.BlockSpec((C, C), lambda b, s, qs, ks: (0, 0)),                 # W_o (resident)
                pl.BlockSpec((1, C), lambda b, s, qs, ks: (0, 0)),                 # b_o
            ],
            out_specs=pl.BlockSpec((1, tq, C), lambda b, s, qs, ks: (b, qs[s], 0)),
            scratch_shapes=[
                pltpu.VMEM((h, tq, 1), jnp.float32),   # running max m
                pltpu.VMEM((h, tq, 1), jnp.float32),   # running denom l
                pltpu.VMEM((tq, C), jnp.float32),      # context accumulator
            ],
        ),
        compiler_params=pltpu.CompilerParams(
            dimension_semantics=("parallel", "arbitrary")),
    )(q_sched, kv_sched, q, kv, wo, bo)
    return out


# --------------------------------------------------------------------------
# Pure-JAX reference (f32) mirroring the PyTorch forward
# --------------------------------------------------------------------------
def _reference(x, params, h):
    B, T, C = x.shape
    d_k = C // h
    q = x @ params["wq"] + params["bq"]
    k = x @ params["wk"] + params["bk"]
    v = x @ params["wv"] + params["bv"]
    split = lambda t: t.reshape(B, T, h, d_k).transpose(0, 2, 1, 3)
    q, k, v = split(q), split(k), split(v)
    scores = jnp.einsum('bhtd,bhsd->bhts', q, k) * (d_k ** -0.5)
    mask = jnp.tril(jnp.ones((T, T), dtype=bool))
    scores = jnp.where(mask, scores, -jnp.inf)
    p = jax.nn.softmax(scores, axis=-1)
    ctx = jnp.einsum('bhts,bhsd->bhtd', p, v)
    merged = ctx.transpose(0, 2, 1, 3).reshape(B, T, C)
    return merged @ params["wo"] + params["bo"]


if __name__ == "__main__":
    # 2 q-tiles x 2 kv-tiles at the default 256 tile size, so the triangular
    # schedule (3 live blocks of 4), both masked and unmasked block paths, and
    # the batch "parallel" axis are all exercised.
    B, T, d_model, h = 2, 512, 128, 4

    key = jax.random.PRNGKey(0)
    ks = jax.random.split(key, 9)
    w_scale = 1.0 / (d_model ** 0.5)

    params = {
        "wq": jax.random.normal(ks[0], (d_model, d_model), jnp.float32) * w_scale,
        "bq": jax.random.normal(ks[1], (1, d_model), jnp.float32) * 0.01,
        "wk": jax.random.normal(ks[2], (d_model, d_model), jnp.float32) * w_scale,
        "bk": jax.random.normal(ks[3], (1, d_model), jnp.float32) * 0.01,
        "wv": jax.random.normal(ks[4], (d_model, d_model), jnp.float32) * w_scale,
        "bv": jax.random.normal(ks[5], (1, d_model), jnp.float32) * 0.01,
        "wo": jax.random.normal(ks[6], (d_model, d_model), jnp.float32) * w_scale,
        "bo": jax.random.normal(ks[7], (1, d_model), jnp.float32) * 0.01,
    }

    x = jax.random.normal(ks[8], (B, T, d_model), jnp.float32)

    out = jax.block_until_ready(multi_head_attention(x, params, h))
    ref = _reference(x, params, h)

    assert out.shape == (B, T, d_model)
    # Tolerances account for bf16 MXU operands (f32 accumulation), bf16 activations,
    # and (on v6e/v7x) bf16 exponentials vs the f32 reference.
    max_err = float(jnp.max(jnp.abs(out - ref)))
    mean_err = float(jnp.mean(jnp.abs(out - ref)))
    assert max_err < 2e-1 and mean_err < 2.5e-2, (
        f"mismatch vs reference: max {max_err}, mean {mean_err}")

    print("KERNEL_OK")
</pallas_src>

<mosaic_0001>
module attributes {stable_mosaic.version = 11 : i64} {
  func.func @_qkv_proj_kernel(%arg0: i32, %arg1: i32, %arg2: memref<1x256x128xbf16, #tpu.memory_space<vmem>>, %arg3: memref<128x384xbf16, #tpu.memory_space<vmem>>, %arg4: memref<1x384xf32, #tpu.memory_space<vmem>>, %arg5: memref<1x256x128xbf16, #tpu.memory_space<vmem>>, %arg6: memref<1x256x256xbf16, #tpu.memory_space<vmem>>) attributes {dimension_semantics = [#tpu.dimension_semantics<parallel>, #tpu.dimension_semantics<parallel>], iteration_bounds = array<i64: 2, 2>, scalar_prefetch = 0 : i64, scratch_operands = 0 : i64, tpu.core_type = #tpu.core_type<tc>, window_params = [{transform_indices = @transform_0, window_bounds = array<i64: 1, 256, 128>}, {pipeline_mode = #tpu.pipeline_mode<synchronous>, transform_indices = @transform_1, window_bounds = array<i64: 128, 384>}, {pipeline_mode = #tpu.pipeline_mode<synchronous>, transform_indices = @transform_2, window_bounds = array<i64: 1, 384>}, {transform_indices = @transform_3, window_bounds = array<i64: 1, 256, 128>}, {transform_indices = @transform_4, window_bounds = array<i64: 1, 256, 256>}]} {
    %c0 = arith.constant 0 : index
    %c0_0 = arith.constant 0 : index
    %c0_1 = arith.constant 0 : index
    %0 = vector.load %arg2[%c0, %c0_0, %c0_1] : memref<1x256x128xbf16, #tpu.memory_space<vmem>>, vector<1x256x128xbf16>
    %1 = vector.shape_cast %0 : vector<1x256x128xbf16> to vector<256x128xbf16>
    %c0_2 = arith.constant 0 : index
    %c0_3 = arith.constant 0 : index
    %2 = vector.load %arg3[%c0_2, %c0_3] : memref<128x384xbf16, #tpu.memory_space<vmem>>, vector<128x384xbf16>
    %cst = arith.constant dense<0.000000e+00> : vector<256x384xf32>
    %3 = tpu.matmul %1, %2, %cst {dimension_numbers = #tpu.dot_dimension_numbers<[1], [0], [0], [1], [0, 0, 1, 1], [], []>} : vector<256x128xbf16>, vector<128x384xbf16>, vector<256x384xf32> -> vector<256x384xf32>
    %c0_4 = arith.constant 0 : index
    %c0_5 = arith.constant 0 : index
    %4 = vector.load %arg4[%c0_4, %c0_5] : memref<1x384xf32, #tpu.memory_space<vmem>>, vector<1x384xf32>
    %5 = vector.broadcast %4 : vector<1x384xf32> to vector<256x384xf32>
    %6 = arith.addf %3, %5 : vector<256x384xf32>
    %7 = vector.extract_strided_slice %6 {offsets = [0, 0], sizes = [256, 128], strides = [1, 1]} : vector<256x384xf32> to vector<256x128xf32>
    %8 = arith.truncf %7 : vector<256x128xf32> to vector<256x128xbf16>
    %c0_6 = arith.constant 0 : index
    %c0_7 = arith.constant 0 : index
    %c0_8 = arith.constant 0 : index
    %9 = vector.load %arg5[%c0_6, %c0_7, %c0_8] : memref<1x256x128xbf16, #tpu.memory_space<vmem>>, vector<1x256x128xbf16>
    %10 = vector.shape_cast %9 : vector<1x256x128xbf16> to vector<256x128xbf16>
    %11 = vector.shape_cast %8 : vector<256x128xbf16> to vector<1x256x128xbf16>
    tpu.vector_store %arg5[%c0_6, %c0_7, %c0_8], %11 {strides = array<i32>} : memref<1x256x128xbf16, #tpu.memory_space<vmem>>, vector<1x256x128xbf16>,
    %12 = vector.extract_strided_slice %6 {offsets = [0, 128], sizes = [256, 256], strides = [1, 1]} : vector<256x384xf32> to vector<256x256xf32>
    %13 = arith.truncf %12 : vector<256x256xf32> to vector<256x256xbf16>
    %c0_9 = arith.constant 0 : index
    %c0_10 = arith.constant 0 : index
    %c0_11 = arith.constant 0 : index
    %14 = vector.load %arg6[%c0_9, %c0_10, %c0_11] : memref<1x256x256xbf16, #tpu.memory_space<vmem>>, vector<1x256x256xbf16>
    %15 = vector.shape_cast %14 : vector<1x256x256xbf16> to vector<256x256xbf16>
    %16 = vector.shape_cast %13 : vector<256x256xbf16> to vector<1x256x256xbf16>
    tpu.vector_store %arg6[%c0_9, %c0_10, %c0_11], %16 {strides = array<i32>} : memref<1x256x256xbf16, #tpu.memory_space<vmem>>, vector<1x256x256xbf16>,
    return
  }
  func.func @transform_0(%arg0: i32, %arg1: i32) -> (i32, i32, i32) {
    %c0_i32 = arith.constant 0 : i32
    %c0_i32_0 = arith.constant 0 : i32
    return %arg0, %arg1, %c0_i32 : i32, i32, i32
  }
  func.func @transform_1(%arg0: i32, %arg1: i32) -> (i32, i32) {
    %c0_i32 = arith.constant 0 : i32
    %c0_i32_0 = arith.constant 0 : i32
    %c0_i32_1 = arith.constant 0 : i32
    return %c0_i32, %c0_i32_0 : i32, i32
  }
  func.func @transform_2(%arg0: i32, %arg1: i32) -> (i32, i32) {
    %c0_i32 = arith.constant 0 : i32
    %c0_i32_0 = arith.constant 0 : i32
    %c0_i32_1 = arith.constant 0 : i32
    return %c0_i32, %c0_i32_0 : i32, i32
  }
  func.func @transform_3(%arg0: i32, %arg1: i32) -> (i32, i32, i32) {
    %c0_i32 = arith.constant 0 : i32
    %c0_i32_0 = arith.constant 0 : i32
    return %arg0, %arg1, %c0_i32 : i32, i32, i32
  }
  func.func @transform_4(%arg0: i32, %arg1: i32) -> (i32, i32, i32) {
    %c0_i32 = arith.constant 0 : i32
    %c0_i32_0 = arith.constant 0 : i32
    return %arg0, %arg1, %c0_i32 : i32, i32, i32
  }
}

</mosaic_0001>

<bundles_post_ra>
// kernel: tpu_custom_call.1
= control target key start
LH: loop header
LB: loop body
LE: loop exit
PB: predicated region body
PF: predicated region fallthrough
CT: control target
= control target key end

     0   :  { %s2729_s0 = inlined_call_operand.hbm [shape: bf16[2,512,128], index: 0, kind: input, shape index: {}]   ;;  %s2730_s1 = inlined_call_operand.hbm [shape: bf16[128,384], index: 1, kind: input, shape index: {}]   ;;  %s2731_s2 = inlined_call_operand.vmem [shape: f32[1,384], index: 2, kind: input, shape index: {}]   ;;  %s2732_s3 = inlined_call_operand.hbm [shape: bf16[2,512,128], index: 3, kind: output, shape index: {0}]   ;;  %s2733_s4 = inlined_call_operand.hbm [shape: bf16[2,512,256], index: 4, kind: output, shape index: {1}]  }
   0x1   :  { %2740 = sst [smem:[#allocation18_spill]] %s2730_s1 }
   0x2   :  { %2741 = sst [smem:[#allocation19_spill]] %s2733_s4 }
   0x3   :  { %10 = vsyncpa [#allocation3], 0 }
   0x4   :  { %12 = vsyncpa [#allocation3 + $0x1], 0 }
   0x5   :  { %13 = vsyncpa [#allocation6], 0 }
   0x6   :  { %14 = vsyncpa [#allocation4], 0 }
   0x7   :  { %16 = vsyncpa [#allocation4 + $0x1], 0 }
   0x8   :  { %17 = vsyncpa [#allocation9], 0 }
   0x9   :  { %19 = vsyncpa [#allocation9 + $0x1], 0  ;;  %s2236_s15 = smov 0   ;;  %s2238_s16 = smov 0  }
   0xa   :  { %s2240_s17 = smov 0   ;;  %s2242_s18 = smov 0  }
   0xb   :  { %s2244_s19 = smov 0   ;;  %s2246_s20 = smov 0  }
   0xc   :  { %s2248_s21 = smov 0   ;;  %s2250_s22 = smov 0  }
   0xd LB: > { %2742 = sst [smem:[#allocation14_spill]] %s2168_s15  ;;  %s1484_s23 = sadd.s32 4294967295, %s2196_s22   ;;  %s2196_s22 = sphi %s2250_s22, %s25_s22   ;;  %s2192_s21 = sphi %s2248_s21, %s2767_s21   ;;  %s2188_s20 = sphi %s2246_s20, %s2762_s20   ;;  %s2184_s19 = sphi %s2244_s19, %s2766_s19   ;;  %s2180_s18 = sphi %s2242_s18, %s2761_s18   ;;  %s2176_s17 = sphi %s2240_s17, %s2765_s17   ;;  %s2172_s16 = sphi %s2238_s16, %s2764_s16   ;;  %s2168_s15 = sphi %s2236_s15, %s2763_s15  }
   0xe   : > { %2743 = sst [smem:[#allocation15_spill]] %s2188_s20  ;;  %s1485_s24 = sadd.s32 4294967294, %s2196_s22  }
   0xf   : > { %p59_p0 = scmp.ne.s32.totalorder %s2172_s16, %s2168_s15  ;;  %p2280_p1 = scmp.eq.s32.totalorder %s1484_s23, 0 }
  0x10   : > { %p2284_p2 = scmp.eq.s32.totalorder %s1484_s23, 3  ;;  %p133_p3 = scmp.eq.s32.totalorder %s1485_s24, 3 }
  0x11   : > { %p2290_p4 = por %p2280_p1, %p59_p0  ;;  %p1486_p5 = scmp.ge.s32.totalorder %s2196_s22, 1 }
  0x12   : > { %p2295_p6 = por %p133_p3, %p59_p0  ;;  %p168_p7 = scmp.lt.s32.totalorder %s2196_s22, 5 }
  0x13   : > { %s2746_s27 = scalar_select %p2290_p4, 1, 0 }
  0x14   : > { %s2747_s28 = scalar_select %p2295_p6, 1, 0 }
  0x15   : > { %p2300_p8 = pnand %p1486_p5, %p168_p7  ;;  %s2198_s30 = smov [#allocation5]  }
  0x16   : > { %2748 = sst [smem:[#allocation16_spill]] %s2747_s28  ;;  %s180_s5 = sshll.u32 %s2198_s30, 4  ;;  %s181_s5 = int_to_ptr.vmem [resolvable:$true] %s180_s5 }
  0x17   : > { %p1871_p9 = pneg %p2300_p8  ;;  %s2023_s6 = scalar_lea.vmem %s181_s5, 3072 }
  0x18   : > { %p2024_p12 = scmp.ne.s32.totalorder %s181_s5, %s2023_s6  ;;  %p2031_p3 = scmp.lt.s32.totalorder %s181_s5, %s181_s5 }
  0x19   : > { %p1872_p10 = pnand %p1871_p9, %p2280_p1  ;;  %p2032_p6 = scmp.lt.s32.totalorder %s2023_s6, %s2023_s6 }
  0x1b   : > { %p2014_p11 = pneg %p1872_p10  ;;  %p2033_p4 = por %p2032_p6, %p2031_p3 }
  0x1d   : > { %p2026_p13 = pnand %p2024_p12, %p2014_p11 }
  0x1f   : > { %p2027_p0 = pneg %p2026_p13 }
  0x21   : > { %p2034_p5 = pnand %p2033_p4, %p2027_p0 }
  0x23   : > { %2037 = shalt.err (!%p2034_p5)
}
  0x24   : > { %s2199_s7 = smov 192   ;;  %s2200_s8 = smov 12  }
  0x25   : > { %s2750_s1 = sld [smem:[#allocation18_spill]]  ;;  %s34_s11 = sadd.s32 1, %s2188_s20 }
  0x26   : > { %p35_p4 = scmp.ge.s32.totalorder %s34_s11, 2  ;;  %s37_s12 = sadd.s32 1, %s2192_s21 }
  0x27   : > { %s46_s13 = sadd.s32 1, %s2176_s17  ;;  %p53_p6 = scmp.ne.s32.totalorder %s2176_s17, %s2172_s16 }
  0x28   : > { %s2769_s11 = smov (%p35_p4, %s34_s11), 0  ;;  %s2771_s12 = smov (!%p35_p4, %s37_s12), %s2192_s21 }
  0x29   : > { %2751 = sst [smem:[#allocation17_spill]] %s2769_s11  ;;  %s42_s14 = ssub.s32 %s2188_s20, %s2769_s11 }
  0x2a   : > { %p54_p7 = scmp.eq.s32.totalorder %s2196_s22, 0  ;;  %p39_p9 = scmp.ge.s32.totalorder %s2771_s12, 2 }
  0x2b   : > { %1874 = dma.hbm_to_vmem [thread:$0]  (!%p1872_p10), %s2750_s1, 3072, %s181_s5, [#allocation6], %s2199_s7, %s2199_s7, %s2200_s8  }
  0x2c   : > { %p2324_p11 = por %p2284_p2, %p53_p6  ;;  %p2328_p10 = por %p54_p7, %p53_p6 }
  0x2d   : > { %p1887_p12 = scmp.lt.s32.totalorder %s2196_s22, 4  ;;  %s2773_s12 = smov (%p39_p9, %s2771_s12), 0 }
  0x2e   : > { %s197_s30 = sand.u32 1, %s2176_s17   ;;  %s1490_s5 = sshll.u32 %s2188_s20, 5 }
  0x2f   : > { %s41_s6 = ssub.s32 %s2192_s21, %s2773_s12  ;;  %s1489_s8 = sshll.u32 %s197_s30, 7 }
  0x30   : > { %s43_s7 = sor.u32 %s42_s14, %s41_s6  ;;  %s1491_s26 = sshll.u32 %s2192_s21, 6 }
  0x31   : > { %p44_p13 = scmp.eq.s32.totalorder %s43_s7, 0  ;;  %s201_s9 = scalar_lea.vmem [#allocation2], %s1489_s8 }
  0x32   : > { %s210_s10 = sshll.u32 %s201_s9, 4  ;;  %s207_s11 = sadd.s32 %s1491_s26, %s1490_s5  ;;  %s211_s10 = int_to_ptr.vmem [resolvable:$true] %s210_s10 }
  0x33   : > { %s2341_s1 = scalar_select %p44_p13, %s2176_s17, %s46_s13  }
  0x34   : > { %s1492_s28 = sshll.u32 %s207_s11, 6  ;;  %p2347_p2 = pnand %p1887_p12, %p2328_p10 }
  0x35   : > { %s209_s14 = scalar_lea.hbm %s2729_s0, %s1492_s28  ;;  %s198_s6 = scalar_lea.sflag [#allocation3], %s197_s30 }
  0x36   : > { %p2040_p0 = pneg %p2347_p2  ;;  %s2051_s7 = scalar_lea.vmem %s211_s10, 2048 }
  0x37   : > { %p2052_p3 = scmp.ne.s32.totalorder %s211_s10, %s2051_s7  ;;  %s2201_s13 = smov [#allocation2]  }
  0x38   : > { %s2056_s11 = sshll.u32 %s2201_s13, 4  ;;  %s2057_s11 = int_to_ptr.vmem [resolvable:$false] %s2056_s11 }
  0x39   : > { %p2054_p5 = pnand %p2052_p3, %p2040_p0  ;;  %s2058_s24 = scalar_lea.vmem %s2057_s11, 4096 }
  0x3a   : > { %p2059_p6 = scmp.lt.s32.totalorder %s211_s10, %s2057_s11  ;;  %p2060_p7 = scmp.lt.s32.totalorder %s2058_s24, %s2051_s7 }
  0x3b   : > { %p2055_p4 = pneg %p2054_p5 }
  0x3c   : > { %p2061_p9 = por %p2060_p7, %p2059_p6 }
  0x3e   : > { %p2062_p10 = pnand %p2061_p9, %p2055_p4 }
  0x40   : > { %2065 = shalt.err (!%p2062_p10)
}
  0x41   : > { %s2202_s5 = smov 64   ;;  %s2203_s4 = smov 4  }
  0x42   : > { %1878 = dma.hbm_to_vmem [thread:$0]  (!%p2347_p2), %s209_s14, 2048, %s211_s10, %s198_s6, %s2202_s5, %s2202_s5, %s2203_s4  }
  0x43   : > { %222 = sbr.rel (%p2300_p8) target bundleno = 436 (0x1b4), region = 32  ;;  %s2361_s20 = sand.u32 (!%p2300_p8), 1, %s2172_s16  }
  0x44   : > { %s1494_s28 = sshll.u32 (!%p2300_p8), %s2361_s20, 7  ;;  %s225_s30 = scalar_lea.sflag (!%p2300_p8), [#allocation3], %s2361_s20 }
  0x45   : > { %s2367_s8 = scalar_lea.vmem (!%p2300_p8), [#allocation2], %s1494_s28  ;;  %p2755_p12 = scmp.ne.s32.totalorder (!%p2300_p8), %s2746_s27, 0 }
  0x48   : > { %2151 = dma.done.wait (%p2755_p12), %s225_s30, 2048  }
  0x49   : > { %2153 = vsyncadd (%p2755_p12), %s225_s30, 4294965248 }
  0x4a   : > { %2155 = dma.done.wait (%p2280_p1), [#allocation6], 3072  }
  0x4b   : > { %2157 = vsyncadd (%p2280_p1), [#allocation6], 4294964224  ;;  %v2204_v0 = vmov 0   ;;  %v1964_v1 = vld [vmem:[#allocation5 + $0xac] ss:$12 sps:$4 sm:$0xff]   ;;  %v1988_v18 = vld [vmem:[%s2367_s8] sm:$0xff]   ;;  %v332_v41 = vlaneseq }
  0x4c   : > { %603 = vmatprep.mubr.bf16.mxu0 %v2204_v0  ;;  %723 = vmatprep.mubr.bf16.mxu1 %v2204_v0  ;;  %v1966_v2 = vld [vmem:[#allocation5 + $0xa8] ss:$12 sps:$4 sm:$0xff]   ;;  %v1969_v4 = vld [vmem:[#allocation5 + $0x90] ss:$12 sps:$4 sm:$0xff]   ;;  %v1972_v6 = vld [vmem:[#allocation5 + $0x78] ss:$12 sps:$4 sm:$0xff]  }
  0x4d   : > { %571 = vmatprep.subr.bf16.mxu0 %v1964_v1  ;;  %1845 = vmatprep.subr.bf16.mxu1 %v1964_v1  ;;  %v1967_v3 = vld [vmem:[#allocation5 + $0x94] ss:$12 sps:$4 sm:$0xff]   ;;  %v1970_v5 = vld [vmem:[#allocation5 + $0x7c] ss:$12 sps:$4 sm:$0xff]   ;;  %v1973_v7 = vld [vmem:[#allocation5 + $0x64] ss:$12 sps:$4 sm:$0xff]  }
  0x4e   : > { %572 = vmatpush1.bf16.msra.mxu0 %v1966_v2  ;;  %1853 = vmatpush1.bf16.msra.mxu1 %v1966_v2  ;;  %v1975_v8 = vld [vmem:[#allocation5 + $0x60] ss:$12 sps:$4 sm:$0xff]   ;;  %v1978_v10 = vld [vmem:[#allocation5 + $0x48] ss:$12 sps:$4 sm:$0xff]   ;;  %v1981_v12 = vld [vmem:[#allocation5 + $0x30] ss:$12 sps:$4 sm:$0xff]  }
  0x4f   : > { %573 = vmatprep.subr.bf16.mxu0 %v1967_v3  ;;  %1846 = vmatprep.subr.bf16.mxu1 %v1967_v3  ;;  %v1976_v9 = vld [vmem:[#allocation5 + $0x4c] ss:$12 sps:$4 sm:$0xff]   ;;  %v1979_v11 = vld [vmem:[#allocation5 + $0x34] ss:$12 sps:$4 sm:$0xff]   ;;  %v1982_v13 = vld [vmem:[#allocation5 + $0x1c] ss:$12 sps:$4 sm:$0xff]  }
  0x50   : > { %v1984_v14 = vld [vmem:[#allocation5 + $0x18] ss:$12 sps:$4 sm:$0xff]   ;;  %v1987_v16 = vld [vmem:[#allocation5] ss:$12 sps:$4 sm:$0xff]   ;;  %v1990_v17 = vld [vmem:[#allocation5 + $0xb0] ss:$12 sps:$4 sm:$0xff]  }
  0x51   : > { %v1985_v15 = vld [vmem:[#allocation5 + $0x4] ss:$12 sps:$4 sm:$0xff]   ;;  %v1994_v21 = vld [vmem:[#allocation5 + $0x80] ss:$12 sps:$4 sm:$0xff]   ;;  %v1995_v24 = vld [vmem:[#allocation5 + $0x68] ss:$12 sps:$4 sm:$0xff]  }
  0x52   : > { %574 = vmatpush1.bf16.msra.mxu0 %v1969_v4  ;;  %1854 = vmatpush1.bf16.msra.mxu1 %v1969_v4  ;;  %v2381_v19 = vld [vmem:[%s2367_s8 + $0x60] sm:$0xff]   ;;  %v1992_v22 = vld [vmem:[%s2367_s8 + $0x8] sm:$0xff]   ;;  %v1998_v25 = vld [vmem:[#allocation5 + $0x50] ss:$12 sps:$4 sm:$0xff]   ;;  %v2417_v42 = vshrl.u32 %v332_v41, 7  ;;  %s2442_s27 = scalar_lea.vmem [#allocation7], %s1494_s28 }
  0x53   : > { %575 = vmatprep.subr.bf16.mxu0 %v1970_v5  ;;  %1847 = vmatprep.subr.bf16.mxu1 %v1970_v5  ;;  %v1991_v20 = vld [vmem:[#allocation5 + $0x98] ss:$12 sps:$4 sm:$0xff]   ;;  %v2388_v23 = vld [vmem:[%s2367_s8 + $0x68] sm:$0xff]   ;;  %v1996_v26 = vld [vmem:[%s2367_s8 + $0x10] sm:$0xff]   ;;  %s1497_s29 = sshll.u32 %s2361_s20, 8  ;;  %s1604_s9 = sshll.u32 %s2180_s18, 5 }
  0x54   : > { %v1997_v27 = vld [vmem:[%s2367_s8 + $0x70] sm:$0xff]   ;;  %v1999_v28 = vld [vmem:[#allocation5 + $0x38] ss:$12 sps:$4 sm:$0xff]   ;;  %v2002_v29 = vld [vmem:[#allocation5 + $0x20] ss:$12 sps:$4 sm:$0xff]   ;;  %v334_v43 = vsub.s32 0, %v2417_v42 }
  0x55   : > { %v2000_v30 = vld [vmem:[%s2367_s8 + $0x18] sm:$0xff]   ;;  %v2003_v32 = vld [vmem:[#allocation5 + $0x8] ss:$12 sps:$4 sm:$0xff]   ;;  %v2004_v33 = vld [vmem:[%s2367_s8 + $0x20] sm:$0xff]   ;;  %s2496_s26 = scalar_lea.vmem [#allocation8], %s1497_s29  ;;  %s1605_s10 = sshll.u32 %s2184_s19, 6 }
  0x56   : > { %576 = vmatpush1.bf16.msra.mxu0 %v1972_v6  ;;  %1855 = vmatpush1.bf16.msra.mxu1 %v1972_v6  ;;  %v2001_v31 = vld [vmem:[%s2367_s8 + $0x78] sm:$0xff]   ;;  %v2005_v34 = vld [vmem:[%s2367_s8 + $0x28] sm:$0xff]   ;;  %v2006_v35 = vld [vmem:[%s2367_s8 + $0x30] sm:$0xff]   ;;  %s2596_s14 = sadd.s32 %s1605_s10, %s1604_s9  ;;  %s1677_s6 = sshll.u32 %s2180_s18, 6 }
  0x57   : > { %577 = vmatprep.subr.bf16.mxu0 %v1973_v7  ;;  %1848 = vmatprep.subr.bf16.mxu1 %v1973_v7  ;;  %v2007_v36 = vld [vmem:[%s2367_s8 + $0x38] sm:$0xff]   ;;  %v2008_v37 = vld [vmem:[%s2367_s8 + $0x40] sm:$0xff]   ;;  %v2009_v38 = vld [vmem:[%s2367_s8 + $0x48] sm:$0xff]   ;;  %s1609_s7 = sshll.u32 %s2184_s19, 7  ;;  %s1606_s13 = sshll.u32 %s2596_s14, 6 }
  0x58   : > { %v2010_v39 = vld [vmem:[%s2367_s8 + $0x50] sm:$0xff]   ;;  %v2011_v40 = vld [vmem:[%s2367_s8 + $0x58] sm:$0xff]   ;;  %v2423_v44 = vld [vmem:[%s2731_s2] sm:$0x7]  ;;  %s1330_s11 = sshll.u32 %s2442_s27, 4  ;;  %s2619_s18 = sadd.s32 %s1677_s6, %s1609_s7  ;;  %s2632_s11 = int_to_ptr.vmem [resolvable:$true] %s1330_s11 }
  0x59   : > { %v2426_v47 = vrot.slane %v2423_v44, %v334_v43  ;;  %s2627_s5 = scalar_lea.hbm %s2732_s3, %s1606_s13  ;;  %s1349_s4 = sshll.u32 %s2496_s26, 4  ;;  %s2644_s4 = int_to_ptr.vmem [resolvable:$true] %s1349_s4 }
  0x5a   : > { %578 = vmatpush1.bf16.msra.mxu0 %v1975_v8  ;;  %1856 = vmatpush1.bf16.msra.mxu1 %v1975_v8  ;;  %s1610_s28 = sshll.u32 %s2619_s18, 6  ;;  %s2756_s15 = sld [smem:[#allocation19_spill]] }
  0x5b   : > { %579 = vmatprep.subr.bf16.mxu0 %v1976_v9  ;;  %1849 = vmatprep.subr.bf16.mxu1 %v1976_v9  ;;  %s1310_s9 = scalar_lea.sflag [#allocation4], %s2361_s20  ;;  %s2066_s10 = scalar_lea.vmem %s2632_s11, 2048 }
  0x5c   : > { %p2067_p1 = scmp.ne.s32.totalorder %s2632_s11, %s2066_s10  ;;  %s2205_s14 = smov [#allocation7]  }
  0x5d   : > { %s2070_s6 = sshll.u32 %s2205_s14, 4  ;;  %s2071_s6 = int_to_ptr.vmem [resolvable:$false] %s2070_s6 }
  0x5e   : > { %580 = vmatpush1.bf16.msra.mxu0 %v1978_v10  ;;  %1857 = vmatpush1.bf16.msra.mxu1 %v1978_v10  ;;  %p2068_p8 = pnand %p2067_p1, %p2324_p11  ;;  %s2072_s7 = scalar_lea.vmem %s2071_s6, 4096 }
  0x5f   : > { %581 = vmatprep.subr.bf16.mxu0 %v1979_v11  ;;  %1850 = vmatprep.subr.bf16.mxu1 %v1979_v11  ;;  %p2073_p2 = scmp.lt.s32.totalorder %s2632_s11, %s2071_s6  ;;  %p2074_p0 = scmp.lt.s32.totalorder %s2072_s7, %s2066_s10 }
  0x60   : > { %s2757_s25 = smov %s2756_s15  ;;  %s2651_s29 = scalar_lea.hbm %s2756_s15, %s1610_s28 }
  0x61   : > { %p2069_p13 = pneg %p2068_p8  ;;  %p2075_p3 = por %p2074_p0, %p2073_p2 }
  0x62   : > { %582 = vmatpush1.bf16.msra.mxu0 %v1981_v12  ;;  %1858 = vmatpush1.bf16.msra.mxu1 %v1981_v12 }
  0x63   : > { %583 = vmatprep.subr.bf16.mxu0 %v1982_v13  ;;  %1851 = vmatprep.subr.bf16.mxu1 %v1982_v13  ;;  %p2076_p5 = pnand %p2075_p3, %p2069_p13 }
  0x66   : > { %584 = vmatpush1.bf16.msra.mxu0 %v1984_v14  ;;  %1859 = vmatpush1.bf16.msra.mxu1 %v1984_v14 }
  0x67   : > { %585 = vmatprep.subr.bf16.mxu0 %v1985_v15  ;;  %1852 = vmatprep.subr.bf16.mxu1 %v1985_v15 }
  0x6a   : > { %586 = vmatpush1.bf16.msra.mxu0 %v1987_v16  ;;  %1860 = vmatpush1.bf16.msra.mxu1 %v1987_v16 }
  0x6b   : > { %1797 = vmatprep.subr.bf16.mxu1 %v1990_v17 }
  0x6d   : > { %604 = vmatmul.mubr.bf16.vlgmr.msra.gmra.mxu0 %v1988_v18  ;;  %724 = vmatmul.mubr.bf16.vlgmr.msra.gmra.mxu1 %v2381_v19 }
  0x6e   : > { %1798 = vmatpush3.bf16.msra.mxu1 %v1990_v17  ;;  %613 = vmatprep.mubr.bf16.mxu0 %v2204_v0 }
  0x6f   : > { %1799 = vmatprep.subr.bf16.mxu1 %v1991_v20  ;;  %733 = vmatprep.mubr.bf16.mxu1 %v2204_v0 }
  0x72   : > { %1800 = vmatpush3.bf16.msra.mxu1 %v1991_v20 }
  0x73   : > { %1801 = vmatprep.subr.bf16.mxu1 %v1994_v21 }
  0x75   : > { %614 = vmatmul.mubr.bf16.gmra.mxu0 %v1992_v22  ;;  %734 = vmatmul.mubr.bf16.gmra.mxu1 %v2388_v23 }
  0x76   : > { %1802 = vmatpush3.bf16.msra.mxu1 %v1994_v21  ;;  %623 = vmatprep.mubr.bf16.mxu0 %v2204_v0 }
  0x77   : > { %1803 = vmatprep.subr.bf16.mxu1 %v1995_v24  ;;  %743 = vmatprep.mubr.bf16.mxu1 %v2204_v0 }
  0x7a   : > { %1804 = vmatpush3.bf16.msra.mxu1 %v1995_v24 }
  0x7b   : > { %1805 = vmatprep.subr.bf16.mxu1 %v1998_v25 }
  0x7d   : > { %624 = vmatmul.mubr.bf16.gmra.mxu0 %v1996_v26  ;;  %744 = vmatmul.mubr.bf16.gmra.mxu1 %v1997_v27 }
  0x7e   : > { %1806 = vmatpush3.bf16.msra.mxu1 %v1998_v25  ;;  %633 = vmatprep.mubr.bf16.mxu0 %v2204_v0 }
  0x7f   : > { %1807 = vmatprep.subr.bf16.mxu1 %v1999_v28  ;;  %753 = vmatprep.mubr.bf16.mxu1 %v2204_v0 }
  0x82   : > { %1808 = vmatpush3.bf16.msra.mxu1 %v1999_v28 }
  0x83   : > { %1809 = vmatprep.subr.bf16.mxu1 %v2002_v29 }
  0x85   : > { %634 = vmatmul.mubr.bf16.gmra.mxu0 %v2000_v30  ;;  %754 = vmatmul.mubr.bf16.gmra.mxu1 %v2001_v31 }
  0x86   : > { %1810 = vmatpush3.bf16.msra.mxu1 %v2002_v29  ;;  %643 = vmatprep.mubr.bf16.mxu0 %v2204_v0  ;;  %v338_v29 = vsub.s32 1, %v2417_v42 }
  0x87   : > { %1811 = vmatprep.subr.bf16.mxu1 %v2003_v32  ;;  %1813 = vmatprep.mubr.bf16.mxu1 %v1988_v18 }
  0x8a   : > { %1812 = vmatpush3.bf16.msra.mxu1 %v2003_v32 }
  0x8d   : > { %644 = vmatmul.mubr.bf16.gmra.mxu0 %v2004_v33  ;;  %1814 = vmatmul.mubr.bf16.vlgmr.msra.gmra.mxu1 %v1992_v22 }
  0x8e   : > { %653 = vmatprep.mubr.bf16.mxu0 %v2204_v0  ;;  %1817 = vmatprep.mubr.bf16.mxu1 %v1996_v26  ;;  %v342_v26 = vsub.s32 2, %v2417_v42 }
  0x90   : > { %v2475_v32 = vrot.slane %v2423_v44, %v342_v26 }
  0x95   : > { %654 = vmatmul.mubr.bf16.gmra.mxu0 %v2005_v34  ;;  %1818 = vmatmul.mubr.bf16.gmra.mxu1 %v2000_v30 }
  0x96   : > { %663 = vmatprep.mubr.bf16.mxu0 %v2204_v0  ;;  %1821 = vmatprep.mubr.bf16.mxu1 %v2004_v33 }
  0x9d   : > { %664 = vmatmul.mubr.bf16.gmra.mxu0 %v2006_v35  ;;  %1822 = vmatmul.mubr.bf16.gmra.mxu1 %v2005_v34 }
  0x9e   : > { %673 = vmatprep.mubr.bf16.mxu0 %v2204_v0  ;;  %1825 = vmatprep.mubr.bf16.mxu1 %v2006_v35 }
  0xa5   : > { %674 = vmatmul.mubr.bf16.gmra.mxu0 %v2007_v36  ;;  %1826 = vmatmul.mubr.bf16.gmra.mxu1 %v2007_v36 }
  0xa6   : > { %683 = vmatprep.mubr.bf16.mxu0 %v2204_v0  ;;  %1829 = vmatprep.mubr.bf16.mxu1 %v2008_v37 }
  0xad   : > { %684 = vmatmul.mubr.bf16.gmra.mxu0 %v2008_v37  ;;  %1830 = vmatmul.mubr.bf16.gmra.mxu1 %v2009_v38 }
  0xae   : > { %693 = vmatprep.mubr.bf16.mxu0 %v2204_v0  ;;  %1833 = vmatprep.mubr.bf16.mxu1 %v2010_v39 }
  0xb5   : > { %694 = vmatmul.mubr.bf16.gmra.mxu0 %v2009_v38  ;;  %1834 = vmatmul.mubr.bf16.gmra.mxu1 %v2011_v40 }
  0xb6   : > { %703 = vmatprep.mubr.bf16.mxu0 %v2204_v0  ;;  %1837 = vmatprep.mubr.bf16.mxu1 %v2381_v19 }
  0xbd   : > { %704 = vmatmul.mubr.bf16.gmra.mxu0 %v2010_v39  ;;  %1838 = vmatmul.mubr.bf16.gmra.mxu1 %v2388_v23  ;;  %v2484_v39 = vrot.slane %v2423_v44, %v338_v29 }
  0xbe   : > { %713 = vmatprep.mubr.bf16.mxu0 %v2204_v0  ;;  %1841 = vmatprep.mubr.bf16.mxu1 %v1997_v27 }
  0xc5   : > { %714 = vmatmul.mubr.bf16.gmra.mxu0 %v2011_v40  ;;  %1842 = vmatmul.mubr.bf16.gmra.mxu1 %v2001_v31 }
 0x12d   : > { %v605_v45 = vpop.f32.mrf.mxu0  ;;  %v725_v46 = vpop.f32.mrf.mxu1 }
 0x12e   : > { %v606_v52 = vadd.f32 %v605_v45, %v2426_v47  ;;  %v726_v53 = vadd.f32 %v725_v46, %v2426_v47 }
 0x12f   : > { %v2428_v48 = vpop.f32.mrf.mxu0  ;;  %v2430_v49 = vpop.f32.mrf.mxu1 }
 0x131   : > { %v609_v50 = vpop.f32.mrf.mxu0  ;;  %v729_v51 = vpop.f32.mrf.mxu1 }
 0x132   : > { %v610_v54 = vadd.f32 %v609_v50, %v2426_v47  ;;  %v730_v55 = vadd.f32 %v729_v51, %v2426_v47 }
 0x133   : > { %v2436_v56 = vpop.f32.mrf.mxu0  ;;  %v2438_v57 = vpop.f32.mrf.mxu1 }
 0x134   : > { %v1681_v58 = vpack.c.bf16 %v610_v54, %v606_v52  ;;  %v1741_v59 = vpack.c.bf16 %v730_v55, %v726_v53  ;;  %v608_v52 = vadd.f32 %v2428_v48, %v2484_v39 }
 0x135   : > { %v615_v60 = vpop.f32.mrf.mxu0  ;;  %v735_v61 = vpop.f32.mrf.mxu1 }
 0x136   : > { %1682 = vst [vmem:[%s2442_s27] sm:$0xff] %v1681_v58   ;;  %1769 = vst [vmem:[%s2442_s27 + $0x60] sm:$0xff] %v1741_v59   ;;  %v616_v2 = vadd.f32 %v615_v60, %v2426_v47  ;;  %v736_v3 = vadd.f32 %v735_v61, %v2426_v47 }
 0x137   : > { %v617_v62 = vpop.f32.mrf.mxu0  ;;  %v2446_v63 = vpop.f32.mrf.mxu1 }
 0x138   : > { %v618_v45 = vadd.f32 %v617_v62, %v2484_v39 }
 0x139   : > { %v619_v0 = vpop.f32.mrf.mxu0  ;;  %v739_v1 = vpop.f32.mrf.mxu1 }
 0x13a   : > { %v620_v4 = vadd.f32 %v619_v0, %v2426_v47  ;;  %v740_v5 = vadd.f32 %v739_v1, %v2426_v47  ;;  %v612_v1 = vadd.f32 %v2436_v56, %v2484_v39 }
 0x13b   : > { %v621_v6 = vpop.f32.mrf.mxu0  ;;  %v2452_v7 = vpop.f32.mrf.mxu1 }
 0x13c   : > { %v1686_v8 = vpack.c.bf16 %v620_v4, %v616_v2  ;;  %v1746_v9 = vpack.c.bf16 %v740_v5, %v736_v3  ;;  %v622_v54 = vadd.f32 %v621_v6, %v2484_v39 }
 0x13d   : > { %v625_v10 = vpop.f32.mrf.mxu0  ;;  %v745_v11 = vpop.f32.mrf.mxu1 }
 0x13e   : > { %1758 = vst [vmem:[%s2442_s27 + $0x8] sm:$0xff] %v1686_v8   ;;  %1770 = vst [vmem:[%s2442_s27 + $0x68] sm:$0xff] %v1746_v9   ;;  %v626_v16 = vadd.f32 %v625_v10, %v2426_v47  ;;  %v746_v17 = vadd.f32 %v745_v11, %v2426_v47 }
 0x13f   : > { %v2456_v12 = vpop.f32.mrf.mxu0  ;;  %v2458_v13 = vpop.f32.mrf.mxu1 }
 0x140   : > { %v628_v56 = vadd.f32 %v2456_v12, %v2484_v39 }
 0x141   : > { %v629_v14 = vpop.f32.mrf.mxu0  ;;  %v749_v15 = vpop.f32.mrf.mxu1 }
 0x142   : > { %v630_v18 = vadd.f32 %v629_v14, %v2426_v47  ;;  %v750_v19 = vadd.f32 %v749_v15, %v2426_v47 }
 0x143   : > { %v2464_v20 = vpop.f32.mrf.mxu0  ;;  %v2466_v21 = vpop.f32.mrf.mxu1 }
 0x144   : > { %v1691_v22 = vpack.c.bf16 %v630_v18, %v626_v16  ;;  %v1751_v23 = vpack.c.bf16 %v750_v19, %v746_v17 }
 0x145   : > { %v635_v24 = vpop.f32.mrf.mxu0  ;;  %v755_v25 = vpop.f32.mrf.mxu1 }
 0x146   : > { %1759 = vst [vmem:[%s2442_s27 + $0x10] sm:$0xff] %v1691_v22   ;;  %1771 = vst [vmem:[%s2442_s27 + $0x70] sm:$0xff] %v1751_v23   ;;  %v636_v33 = vadd.f32 %v635_v24, %v2426_v47  ;;  %v756_v34 = vadd.f32 %v755_v25, %v2426_v47 }
 0x147   : > { %v637_v27 = vpop.f32.mrf.mxu0  ;;  %v2471_v28 = vpop.f32.mrf.mxu1 }
 0x148   : > { %v638_v8 = vadd.f32 %v637_v27, %v2484_v39  ;;  %v632_v27 = vadd.f32 %v2464_v20, %v2484_v39 }
 0x149   : > { %v639_v30 = vpop.f32.mrf.mxu0  ;;  %v759_v31 = vpop.f32.mrf.mxu1 }
 0x14a   : > { %v640_v35 = vadd.f32 %v639_v30, %v2426_v47  ;;  %v760_v36 = vadd.f32 %v759_v31, %v2426_v47 }
 0x14b   : > { %v641_v37 = vpop.f32.mrf.mxu0  ;;  %v2481_v38 = vpop.f32.mrf.mxu1 }
 0x14c   : > { %v1696_v40 = vpack.c.bf16 %v640_v35, %v636_v33  ;;  %v1756_v41 = vpack.c.bf16 %v760_v36, %v756_v34  ;;  %v642_v17 = vadd.f32 %v641_v37, %v2484_v39 }
 0x14d   : > { %v645_v42 = vpop.f32.mrf.mxu0  ;;  %v1815_v43 = vpop.f32.mrf.mxu1 }
 0x14e   : > { %1760 = vst [vmem:[%s2442_s27 + $0x18] sm:$0xff] %v1696_v40   ;;  %1772 = vst [vmem:[%s2442_s27 + $0x78] sm:$0xff] %v1756_v41   ;;  %v807_v46 = vadd.f32 %v1815_v43, %v2475_v32  ;;  %v646_v59 = vadd.f32 %v645_v42, %v2426_v47 }
 0x14f   : > { %v647_v50 = vpop.f32.mrf.mxu0  ;;  %v798_v51 = vpop.f32.mrf.mxu1 }
 0x150   : > { %v1647_v53 = vpack.c.bf16 %v807_v46, %v618_v45  ;;  %v799_v44 = vadd.f32 %v798_v51, %v2475_v32  ;;  %v648_v20 = vadd.f32 %v647_v50, %v2484_v39 }
 0x151   : > { %v649_v55 = vpop.f32.mrf.mxu0  ;;  %v1816_v58 = vpop.f32.mrf.mxu1 }
 0x152   : > { %1279 = vst [vmem:[%s2496_s26 + $0x10] sm:$0xff] %v1647_v53  ;;  %v1645_v60 = vpack.c.bf16 %v799_v44, %v608_v52  ;;  %v650_v61 = vadd.f32 %v649_v55, %v2426_v47  ;;  %v810_v48 = vadd.f32 %v1816_v58, %v2475_v32 }
 0x153   : > { %v651_v62 = vpop.f32.mrf.mxu0  ;;  %v801_v0 = vpop.f32.mrf.mxu1 }
 0x154   : > { %1277 = vst [vmem:[%s2496_s26] sm:$0xff] %v1645_v60  ;;  %v1701_v2 = vpack.c.bf16 %v650_v61, %v646_v59  ;;  %v1648_v3 = vpack.c.bf16 %v810_v48, %v622_v54  ;;  %v802_v4 = vadd.f32 %v801_v0, %v2475_v32  ;;  %v652_v58 = vadd.f32 %v651_v62, %v2484_v39 }
 0x155   : > { %v655_v5 = vpop.f32.mrf.mxu0  ;;  %v1819_v6 = vpop.f32.mrf.mxu1 }
 0x156   : > { %1761 = vst [vmem:[%s2442_s27 + $0x20] sm:$0xff] %v1701_v2   ;;  %1280 = vst [vmem:[%s2496_s26 + $0x18] sm:$0xff] %v1648_v3  ;;  %v1646_v9 = vpack.c.bf16 %v802_v4, %v612_v1  ;;  %v823_v10 = vadd.f32 %v1819_v6, %v2475_v32  ;;  %v656_v22 = vadd.f32 %v655_v5, %v2426_v47 }
 0x157   : > { %v657_v11 = vpop.f32.mrf.mxu0  ;;  %v814_v14 = vpop.f32.mrf.mxu1 }
 0x158   : > { %1278 = vst [vmem:[%s2496_s26 + $0x8] sm:$0xff] %v1646_v9  ;;  %v1651_v15 = vpack.c.bf16 %v823_v10, %v638_v8  ;;  %v815_v16 = vadd.f32 %v814_v14, %v2475_v32  ;;  %v658_v35 = vadd.f32 %v657_v11, %v2484_v39 }
 0x159   : > { %v659_v18 = vpop.f32.mrf.mxu0  ;;  %v1820_v19 = vpop.f32.mrf.mxu1 }
 0x15a   : > { %1283 = vst [vmem:[%s2496_s26 + $0x30] sm:$0xff] %v1651_v15  ;;  %v1649_v23 = vpack.c.bf16 %v815_v16, %v628_v56  ;;  %v660_v24 = vadd.f32 %v659_v18, %v2426_v47  ;;  %v826_v25 = vadd.f32 %v1820_v19, %v2475_v32 }
 0x15b   : > { %v661_v26 = vpop.f32.mrf.mxu0  ;;  %v817_v12 = vpop.f32.mrf.mxu1 }
 0x15c   : > { %1281 = vst [vmem:[%s2496_s26 + $0x20] sm:$0xff] %v1649_v23  ;;  %v1706_v29 = vpack.c.bf16 %v660_v24, %v656_v22  ;;  %v1652_v30 = vpack.c.bf16 %v826_v25, %v642_v17  ;;  %v818_v31 = vadd.f32 %v817_v12, %v2475_v32  ;;  %v662_v45 = vadd.f32 %v661_v26, %v2484_v39 }
 0x15d   : > { %v665_v33 = vpop.f32.mrf.mxu0  ;;  %v1823_v34 = vpop.f32.mrf.mxu1 }
 0x15e   : > { %1762 = vst [vmem:[%s2442_s27 + $0x28] sm:$0xff] %v1706_v29   ;;  %1284 = vst [vmem:[%s2496_s26 + $0x38] sm:$0xff] %v1652_v30  ;;  %v1650_v36 = vpack.c.bf16 %v818_v31, %v632_v27  ;;  %v839_v37 = vadd.f32 %v1823_v34, %v2475_v32  ;;  %v666_v52 = vadd.f32 %v665_v33, %v2426_v47 }
 0x15f   : > { %v667_v40 = vpop.f32.mrf.mxu0  ;;  %v830_v41 = vpop.f32.mrf.mxu1 }
 0x160   : > { %1282 = vst [vmem:[%s2496_s26 + $0x28] sm:$0xff] %v1650_v36  ;;  %v1655_v42 = vpack.c.bf16 %v839_v37, %v658_v35  ;;  %v831_v43 = vadd.f32 %v830_v41, %v2475_v32  ;;  %v668_v4 = vadd.f32 %v667_v40, %v2484_v39 }
 0x161   : > { %v669_v46 = vpop.f32.mrf.mxu0  ;;  %v1824_v51 = vpop.f32.mrf.mxu1 }
 0x162   : > { %1287 = vst [vmem:[%s2496_s26 + $0x50] sm:$0xff] %v1655_v42  ;;  %v1653_v53 = vpack.c.bf16 %v831_v43, %v648_v20  ;;  %v670_v44 = vadd.f32 %v669_v46, %v2426_v47  ;;  %v842_v54 = vadd.f32 %v1824_v51, %v2475_v32 }
 0x163   : > { %v671_v50 = vpop.f32.mrf.mxu0  ;;  %v833_v55 = vpop.f32.mrf.mxu1 }
 0x164   : > { %1285 = vst [vmem:[%s2496_s26 + $0x40] sm:$0xff] %v1653_v53  ;;  %v1711_v59 = vpack.c.bf16 %v670_v44, %v666_v52  ;;  %v1656_v60 = vpack.c.bf16 %v842_v54, %v662_v45  ;;  %v834_v61 = vadd.f32 %v833_v55, %v2475_v32  ;;  %v672_v15 = vadd.f32 %v671_v50, %v2484_v39 }
 0x165   : > { %v675_v48 = vpop.f32.mrf.mxu0  ;;  %v1827_v0 = vpop.f32.mrf.mxu1 }
 0x166   : > { %1763 = vst [vmem:[%s2442_s27 + $0x30] sm:$0xff] %v1711_v59   ;;  %1288 = vst [vmem:[%s2496_s26 + $0x58] sm:$0xff] %v1656_v60  ;;  %v1654_v1 = vpack.c.bf16 %v834_v61, %v652_v58  ;;  %v855_v5 = vadd.f32 %v1827_v0, %v2475_v32  ;;  %v676_v10 = vadd.f32 %v675_v48, %v2426_v47 }
 0x167   : > { %v677_v2 = vpop.f32.mrf.mxu0  ;;  %v846_v3 = vpop.f32.mrf.mxu1 }
 0x168   : > { %1286 = vst [vmem:[%s2496_s26 + $0x48] sm:$0xff] %v1654_v1  ;;  %v678_v62 = vadd.f32 %v677_v2, %v2484_v39  ;;  %v847_v6 = vadd.f32 %v846_v3, %v2475_v32 }
 0x169   : > { %v679_v8 = vpop.f32.mrf.mxu0  ;;  %v1828_v9 = vpop.f32.mrf.mxu1 }
 0x16a   : > { %v1659_v11 = vpack.c.bf16 %v855_v5, %v678_v62  ;;  %v1657_v14 = vpack.c.bf16 %v847_v6, %v668_v4  ;;  %v680_v56 = vadd.f32 %v679_v8, %v2426_v47  ;;  %v858_v19 = vadd.f32 %v1828_v9, %v2475_v32 }
 0x16b   : > { %v681_v16 = vpop.f32.mrf.mxu0  ;;  %v849_v17 = vpop.f32.mrf.mxu1  ;;  %v738_v5 = vadd.f32 %v2446_v63, %v2484_v39  ;;  %v728_v8 = vadd.f32 %v2430_v49, %v2484_v39  ;;  %v742_v63 = vadd.f32 %v2452_v7, %v2484_v39 }
 0x16c   : > { %1291 = vst [vmem:[%s2496_s26 + $0x70] sm:$0xff] %v1659_v11  ;;  %1289 = vst [vmem:[%s2496_s26 + $0x60] sm:$0xff] %v1657_v14  ;;  %v1716_v18 = vpack.c.bf16 %v680_v56, %v676_v10  ;;  %v682_v22 = vadd.f32 %v681_v16, %v2484_v39  ;;  %v850_v23 = vadd.f32 %v849_v17, %v2475_v32 }
 0x16d   : > { %v685_v24 = vpop.f32.mrf.mxu0  ;;  %v1831_v25 = vpop.f32.mrf.mxu1 }
 0x16e   : > { %1764 = vst [vmem:[%s2442_s27 + $0x38] sm:$0xff] %v1716_v18   ;;  %v1660_v26 = vpack.c.bf16 %v858_v19, %v682_v22  ;;  %v1658_v12 = vpack.c.bf16 %v850_v23, %v672_v15  ;;  %v686_v35 = vadd.f32 %v685_v24, %v2426_v47  ;;  %v871_v44 = vadd.f32 %v1831_v25, %v2475_v32 }
 0x16f   : > { %v687_v27 = vpop.f32.mrf.mxu0  ;;  %v862_v29 = vpop.f32.mrf.mxu1  ;;  %v732_v24 = vadd.f32 %v2438_v57, %v2484_v39 }
 0x170   : > { %1292 = vst [vmem:[%s2496_s26 + $0x78] sm:$0xff] %v1660_v26  ;;  %1290 = vst [vmem:[%s2496_s26 + $0x68] sm:$0xff] %v1658_v12  ;;  %v688_v30 = vadd.f32 %v687_v27, %v2484_v39  ;;  %v863_v31 = vadd.f32 %v862_v29, %v2475_v32 }
 0x171   : > { %v689_v33 = vpop.f32.mrf.mxu0  ;;  %v1832_v34 = vpop.f32.mrf.mxu1 }
 0x172   : > { %v1661_v36 = vpack.c.bf16 %v863_v31, %v688_v30  ;;  %v690_v37 = vadd.f32 %v689_v33, %v2426_v47  ;;  %v874_v0 = vadd.f32 %v1832_v34, %v2475_v32  ;;  %v758_v33 = vadd.f32 %v2471_v28, %v2484_v39 }
 0x173   : > { %v691_v40 = vpop.f32.mrf.mxu0  ;;  %v865_v41 = vpop.f32.mrf.mxu1 }
 0x174   : > { %1293 = vst [vmem:[%s2496_s26 + $0x80] sm:$0xff] %v1661_v36  ;;  %v1721_v20 = vpack.c.bf16 %v690_v37, %v686_v35  ;;  %v692_v42 = vadd.f32 %v691_v40, %v2484_v39  ;;  %v866_v43 = vadd.f32 %v865_v41, %v2475_v32  ;;  %v748_v37 = vadd.f32 %v2458_v13, %v2484_v39 }
 0x175   : > { %v695_v45 = vpop.f32.mrf.mxu0  ;;  %v2562_v46 = vpop.f32.mrf.mxu1  ;;  %v762_v13 = vadd.f32 %v2481_v38, %v2484_v39 }
 0x176   : > { %1765 = vst [vmem:[%s2442_s27 + $0x40] sm:$0xff] %v1721_v20   ;;  %v1662_v51 = vpack.c.bf16 %v866_v43, %v692_v42  ;;  %v696_v58 = vadd.f32 %v695_v45, %v2426_v47  ;;  %v887_v20 = vadd.f32 %v2562_v46, %v2475_v32 }
 0x177   : > { %v697_v52 = vpop.f32.mrf.mxu0  ;;  %v878_v53 = vpop.f32.mrf.mxu1 }
 0x178   : > { %1294 = vst [vmem:[%s2496_s26 + $0x88] sm:$0xff] %v1662_v51  ;;  %v698_v54 = vadd.f32 %v697_v52, %v2484_v39  ;;  %v879_v11 = vadd.f32 %v878_v53, %v2475_v32 }
 0x179   : > { %v699_v50 = vpop.f32.mrf.mxu0  ;;  %v2568_v55 = vpop.f32.mrf.mxu1 }
 0x17a   : > { %v1663_v59 = vpack.c.bf16 %v871_v44, %v698_v54  ;;  %v700_v60 = vadd.f32 %v699_v50, %v2426_v47  ;;  %v752_v54 = vadd.f32 %v2466_v21, %v2484_v39  ;;  %v890_v50 = vadd.f32 %v2568_v55, %v2475_v32 }
 0x17b   : > { %v701_v61 = vpop.f32.mrf.mxu0  ;;  %v881_v48 = vpop.f32.mrf.mxu1 }
 0x17c   : > { %1295 = vst [vmem:[%s2496_s26 + $0x90] sm:$0xff] %v1663_v59  ;;  %v1726_v1 = vpack.c.bf16 %v700_v60, %v696_v58  ;;  %v702_v2 = vadd.f32 %v701_v61, %v2484_v39  ;;  %v882_v25 = vadd.f32 %v881_v48, %v2475_v32 }
 0x17d   : > { %v705_v3 = vpop.f32.mrf.mxu0  ;;  %v1839_v4 = vpop.f32.mrf.mxu1 }
 0x17e   : > { %1766 = vst [vmem:[%s2442_s27 + $0x48] sm:$0xff] %v1726_v1   ;;  %v1664_v62 = vpack.c.bf16 %v874_v0, %v702_v2  ;;  %v903_v6 = vadd.f32 %v1839_v4, %v2475_v32  ;;  %v706_v16 = vadd.f32 %v705_v3, %v2426_v47 }
 0x17f   : > { %v707_v9 = vpop.f32.mrf.mxu0  ;;  %v894_v10 = vpop.f32.mrf.mxu1 }
 0x180   : > { %1296 = vst [vmem:[%s2496_s26 + $0x98] sm:$0xff] %v1664_v62  ;;  %v1671_v14 = vpack.c.bf16 %v903_v6, %v738_v5  ;;  %v708_v56 = vadd.f32 %v707_v9, %v2484_v39  ;;  %v895_v15 = vadd.f32 %v894_v10, %v2475_v32 }
 0x181   : > { %v709_v49 = vpop.f32.mrf.mxu0  ;;  %v1840_v17 = vpop.f32.mrf.mxu1 }
 0x182   : > { %1303 = vst [vmem:[%s2496_s26 + $0xd0] sm:$0xff] %v1671_v14  ;;  %v1665_v18 = vpack.c.bf16 %v879_v11, %v708_v56  ;;  %v1669_v19 = vpack.c.bf16 %v895_v15, %v728_v8  ;;  %v710_v22 = vadd.f32 %v709_v49, %v2426_v47  ;;  %v906_v23 = vadd.f32 %v1840_v17, %v2475_v32 }
 0x183   : > { %v711_v7 = vpop.f32.mrf.mxu0  ;;  %v897_v26 = vpop.f32.mrf.mxu1 }
 0x184   : > { %1297 = vst [vmem:[%s2496_s26 + $0xa0] sm:$0xff] %v1665_v18  ;;  %1301 = vst [vmem:[%s2496_s26 + $0xc0] sm:$0xff] %v1669_v19  ;;  %v1731_v12 = vpack.c.bf16 %v710_v22, %v706_v16  ;;  %v1672_v27 = vpack.c.bf16 %v906_v23, %v742_v63  ;;  %v712_v29 = vadd.f32 %v711_v7, %v2484_v39 }
 0x185   : > { %v898_v30 = vadd.f32 %v897_v26, %v2475_v32  ;;  %v715_v31 = vpop.f32.mrf.mxu0  ;;  %v1843_v57 = vpop.f32.mrf.mxu1 }
 0x186   : > { %1767 = vst [vmem:[%s2442_s27 + $0x50] sm:$0xff] %v1731_v12   ;;  %1304 = vst [vmem:[%s2496_s26 + $0xd8] sm:$0xff] %v1672_v27  ;;  %v1666_v34 = vpack.c.bf16 %v882_v25, %v712_v29  ;;  %v919_v36 = vadd.f32 %v1843_v57, %v2475_v32  ;;  %v716_v45 = vadd.f32 %v715_v31, %v2426_v47 }
 0x187   : > { %v1670_v35 = vpack.c.bf16 %v898_v30, %v732_v24  ;;  %v717_v40 = vpop.f32.mrf.mxu0  ;;  %v910_v41 = vpop.f32.mrf.mxu1 }
 0x188   : > { %1298 = vst [vmem:[%s2496_s26 + $0xa8] sm:$0xff] %v1666_v34  ;;  %v1675_v28 = vpack.c.bf16 %v919_v36, %v758_v33  ;;  %v718_v42 = vadd.f32 %v717_v40, %v2484_v39  ;;  %v911_v43 = vadd.f32 %v910_v41, %v2475_v32 }
 0x189   : > { %1302 = vst [vmem:[%s2496_s26 + $0xc8] sm:$0xff] %v1670_v35  ;;  %v719_v51 = vpop.f32.mrf.mxu0  ;;  %v1844_v46 = vpop.f32.mrf.mxu1 }
 0x18a   : > { %1307 = vst [vmem:[%s2496_s26 + $0xf0] sm:$0xff] %v1675_v28  ;;  %v1667_v52 = vpack.c.bf16 %v887_v20, %v718_v42  ;;  %v1673_v53 = vpack.c.bf16 %v911_v43, %v748_v37  ;;  %v720_v44 = vadd.f32 %v719_v51, %v2426_v47  ;;  %v922_v38 = vadd.f32 %v1844_v46, %v2475_v32 }
 0x18b   : > { %v721_v58 = vpop.f32.mrf.mxu0  ;;  %v913_v59 = vpop.f32.mrf.mxu1 }
 0x18c   : > { %1299 = vst [vmem:[%s2496_s26 + $0xb0] sm:$0xff] %v1667_v52  ;;  %1305 = vst [vmem:[%s2496_s26 + $0xe0] sm:$0xff] %v1673_v53  ;;  %v1736_v47 = vpack.c.bf16 %v720_v44, %v716_v45  ;;  %v1676_v60 = vpack.c.bf16 %v922_v38, %v762_v13  ;;  %v722_v61 = vadd.f32 %v721_v58, %v2484_v39 }
 0x18d   : > { %v914_v48 = vadd.f32 %v913_v59, %v2475_v32 }
 0x18e   : > { %1768 = vst [vmem:[%s2442_s27 + $0x58] sm:$0xff] %v1736_v47   ;;  %1308 = vst [vmem:[%s2496_s26 + $0xf8] sm:$0xff] %v1676_v60  ;;  %v1668_v21 = vpack.c.bf16 %v890_v50, %v722_v61 }
 0x18f   : > { %v1674_v55 = vpack.c.bf16 %v914_v48, %v752_v54 }
 0x190   : > { %2079 = shalt.err (!%p2076_p5)
}
 0x191   : > { %s2080_s27 = scalar_lea.hbm %s2627_s5, 2048  ;;  %s2084_s19 = scalar_lea.hbm %s2732_s3, 8192 }
 0x192   : > { %p2081_p4 = scmp.ne.s32.totalorder %s2627_s5, %s2080_s27  ;;  %p2085_p9 = scmp.lt.s32.totalorder %s2627_s5, %s2732_s3 }
 0x193   : > { %p2086_p10 = scmp.lt.s32.totalorder %s2084_s19, %s2080_s27 }
 0x194   : > { %p2082_p6 = pnand %p2081_p4, %p2324_p11 }
 0x195   : > { %p2087_p12 = por %p2086_p10, %p2085_p9 }
 0x196   : > { %p2083_p7 = pneg %p2082_p6 }
 0x198   : > { %p2088_p1 = pnand %p2087_p12, %p2083_p7 }
 0x19a   : > { %2091 = shalt.err (!%p2088_p1)
}
 0x19b   : > { %s2206_s30 = smov 64   ;;  %s2207_s8 = smov 4   ;;  %1300 = vst [vmem:[%s2496_s26 + $0xb8] sm:$0xff] %v1668_v21  ;;  %1306 = vst [vmem:[%s2496_s26 + $0xe8] sm:$0xff] %v1674_v55 }
 0x19c   : > { %1867 = dma.vmem_to_hbm [thread:$0]  (%p2324_p11), %s2632_s11, 2048, %s2627_s5, %s1310_s9, %s2206_s30, %s2206_s30, %s2207_s8  }
 0x19d   : > { %s1315_s15 = scalar_lea.sflag [#allocation9], %s2361_s20  ;;  %s2092_s10 = scalar_lea.vmem %s2644_s4, 4096 }
 0x19e   : > { %p2093_p8 = scmp.ne.s32.totalorder %s2644_s4, %s2092_s10  ;;  %s2208_s14 = smov [#allocation8]  }
 0x19f   : > { %s2096_s6 = sshll.u32 %s2208_s14, 4  ;;  %s2097_s6 = int_to_ptr.vmem [resolvable:$false] %s2096_s6 }
 0x1a0   : > { %p2094_p13 = pnand %p2093_p8, %p2324_p11  ;;  %s2098_s7 = scalar_lea.vmem %s2097_s6, 8192 }
 0x1a1   : > { %p2099_p0 = scmp.lt.s32.totalorder %s2644_s4, %s2097_s6  ;;  %p2100_p3 = scmp.lt.s32.totalorder %s2098_s7, %s2092_s10 }
 0x1a2   : > { %p2095_p2 = pneg %p2094_p13 }
 0x1a3   : > { %p2101_p5 = por %p2100_p3, %p2099_p0 }
 0x1a5   : > { %p2102_p4 = pnand %p2101_p5, %p2095_p2 }
 0x1a7   : > { %2105 = shalt.err (!%p2102_p4)
}
 0x1a8   : > { %s2106_s26 = scalar_lea.hbm %s2651_s29, 4096  ;;  %s2110_s9 = scalar_lea.hbm %s2757_s25, 16384 }
 0x1a9   : > { %p2107_p6 = scmp.ne.s32.totalorder %s2651_s29, %s2106_s26  ;;  %p2111_p10 = scmp.lt.s32.totalorder %s2651_s29, %s2757_s25 }
 0x1aa   : > { %p2112_p12 = scmp.lt.s32.totalorder %s2110_s9, %s2106_s26 }
 0x1ab   : > { %p2108_p7 = pnand %p2107_p6, %p2324_p11 }
 0x1ac   : > { %p2113_p1 = por %p2112_p12, %p2111_p10 }
 0x1ad   : > { %p2109_p9 = pneg %p2108_p7 }
 0x1af   : > { %p2114_p8 = pnand %p2113_p1, %p2109_p9 }
 0x1b1   : > { %2117 = shalt.err (!%p2114_p8)
}
 0x1b2   : > { %s2209_s18 = smov 128   ;;  %s2210_s19 = smov 8  }
 0x1b3   : > { %1868 = dma.vmem_to_hbm [thread:$0]  (%p2324_p11), %s2644_s4, 4096, %s2651_s29, %s1315_s15, %s2209_s18, %s2209_s18, %s2210_s19  }
 0x1b4 PF: > { %s2758_s24 = sld [smem:[#allocation14_spill]]  ;;  %p1889_p13 = scmp.ge.s32.totalorder %s2196_s22, 2 }
 0x1b5   : > { %s2759_s28 = sld [smem:[#allocation16_spill]] }
 0x1ba   : > { %s1364_s30 = sand.u32 1, %s2758_s24  }
 0x1bb   : > { %p2760_p2 = scmp.ne.s32.totalorder %s2759_s28, 0  ;;  %s1365_s8 = scalar_lea.sflag [#allocation4], %s1364_s30 }
 0x1bd   : > { %p1880_p0 = pnand %p1889_p13, %p2760_p2 }
 0x1bf   : > { %p1881_p3 = pneg %p1880_p0 }
 0x1c1   : > { %2159 = dma.done.wait (%p1881_p3), %s1365_s8, 2048  }
 0x1c2   : > { %2161 = vsyncadd (%p1881_p3), %s1365_s8, 4294965248  ;;  %s1374_s10 = scalar_lea.sflag [#allocation9], %s1364_s30 }
 0x1c3   : > { %2163 = dma.done.wait (%p1881_p3), %s1374_s10, 4096  }
 0x1c4   : > { %2165 = vsyncadd (%p1881_p3), %s1374_s10, 4294963200  ;;  %s25_s22 = sadd.s32 1, %s2196_s22   ;;  %s2761_s18 = sld [smem:[#allocation15_spill]] }
 0x1c5   : > { %p22_p5 = scmp.ge.s32.totalorder %s25_s22, 6   ;;  %s2762_s20 = sld [smem:[#allocation17_spill]] }
 0x1c6   : > { %s2763_s15 = smov %s2172_s16  ;;  %s2764_s16 = smov %s2176_s17 }
 0x1c7   : > { %s2765_s17 = smov %s2341_s1  ;;  %s2766_s19 = smov %s2192_s21 }
 0x1c8   : > { %s2767_s21 = smov %s2773_s12  ;;  %24 = sbr.rel (!%p22_p5) target bundleno = 13 (0xd), region = 98 }
 0x1cd   :  { %1379 = vsyncpa [#allocation3], 1 }
 0x1ce   :  { %1381 = vsyncpa [#allocation3 + $0x1], 1 }
 0x1cf   :  { %1382 = vsyncpa [#allocation6], 1 }
 0x1d0   :  { %1383 = vsyncpa [#allocation4], 1 }
 0x1d1   :  { %1385 = vsyncpa [#allocation4 + $0x1], 1 }
 0x1d2   :  { %1386 = vsyncpa [#allocation9], 1 }
 0x1d3   :  { %1388 = vsyncpa [#allocation9 + $0x1], 1 }

</bundles_post_ra>
